<compile_context>
chip_gen: v7x
topology: tpu7x:2x2x1
jax: 0.10.0
libtpu: 0.0.40
codegen_flags: <defaults>
</compile_context>

<pallas_src>
import numpy as np
import jax
import jax.numpy as jnp
from jax import lax
from jax.experimental import pallas as pl
from jax.experimental.pallas import tpu as pltpu

_EPS = 1e-12  # torch.nn.functional.normalize default eps


def _ceil_div(a, b):
    return -(-a // b)


def _is_scalar_valid(valid):
    """torch's `isinstance(valid, int)` path, extended to numpy ints / 0-d arrays."""
    if isinstance(valid, (int, np.integer)):
        return True
    return hasattr(valid, "ndim") and getattr(valid, "ndim") == 0


def _face_tiling(B, Fn, target_tile_sublanes):
    """Choose (tile_s, Fs): faces are folded lane-dense into (Fs, 128) rows."""
    target = max(8, (int(target_tile_sublanes) // 8) * 8)
    Fs0 = _ceil_div(Fn, 128)             # minimal sublane rows to hold all faces
    if Fs0 <= 8:
        tile_s = Fs0                      # tiny mesh: single small full-extent tile
    elif Fs0 > target:
        tile_s = target                   # multiple of 8
    elif B == 1 and Fs0 >= 16:
        # keep >=2 grid steps so both v7x TensorCores get work
        tile_s = ((_ceil_div(Fs0, 2)) + 7) // 8 * 8
    else:
        tile_s = min(target, ((Fs0 + 7) // 8) * 8)
    Fs = _ceil_div(Fs0, tile_s) * tile_s
    return tile_s, Fs


def _make_kernel(tile_s, use_mask):
    """Build the per-block kernel; compute is strip-mined over 8-sublane strips."""
    strip = 8 if (tile_s % 8 == 0) else tile_s
    n_strips = tile_s // strip

    def compute_strip(pts_ref, mask_ref, loss_ref, row0):
        sl = pl.ds(row0, strip)

        def o(r):      # predicted-mesh coordinate row r (f32 regardless of transport dtype)
            return pts_ref[0, r, sl, :].astype(jnp.float32)

        def g(r):      # ground-truth coordinate row r
            return pts_ref[0, 9 + r, sl, :].astype(jnp.float32)

        def normalize3(x, y, z):
            # F.normalize: v / max(||v||, eps) == v * rsqrt(max(||v||^2, eps^2))  (EUP slot)
            inv = lax.rsqrt(jnp.maximum(x * x + y * y + z * z, _EPS * _EPS))
            return x * inv, y * inv, z * inv

        # predicted-mesh edge vectors (pure componentwise VPU work)
        v1ox, v1oy, v1oz = normalize3(o(3) - o(0), o(4) - o(1), o(5) - o(2))
        v2ox, v2oy, v2oz = normalize3(o(6) - o(0), o(7) - o(1), o(8) - o(2))
        v3ox, v3oy, v3oz = normalize3(o(6) - o(3), o(7) - o(4), o(8) - o(5))

        # ground-truth edge vectors and face normal = normalize(cross(v1_gt, v2_gt))
        v1gx, v1gy, v1gz = normalize3(g(3) - g(0), g(4) - g(1), g(5) - g(2))
        v2gx, v2gy, v2gz = normalize3(g(6) - g(0), g(7) - g(1), g(8) - g(2))
        ngx, ngy, ngz = normalize3(v1gy * v2gz - v1gz * v2gy,
                                   v1gz * v2gx - v1gx * v2gz,
                                   v1gx * v2gy - v1gy * v2gx)

        c1 = jnp.abs(v1ox * ngx + v1oy * ngy + v1oz * ngz)
        c2 = jnp.abs(v2ox * ngx + v2oy * ngy + v2oz * ngz)
        c3 = jnp.abs(v3ox * ngx + v3oy * ngy + v3oz * ngz)
        if use_mask:
            m = mask_ref[0, 0, sl, :].astype(jnp.float32)
            c1, c2, c3 = c1 * m, c2 * m, c3 * m
        loss_ref[0, 0, sl, :] = c1
        loss_ref[0, 1, sl, :] = c2
        loss_ref[0, 2, sl, :] = c3

    def run(pts_ref, mask_ref, loss_ref):
        if n_strips == 1:
            compute_strip(pts_ref, mask_ref, loss_ref, 0)
        else:
            def body(i, carry):
                compute_strip(pts_ref, mask_ref, loss_ref,
                              pl.multiple_of(i * strip, strip))
                return carry
            lax.fori_loop(0, n_strips, body, 0, unroll=(n_strips <= 8))

    if use_mask:
        def kernel(pts_ref, mask_ref, loss_ref):
            run(pts_ref, mask_ref, loss_ref)
    else:
        def kernel(pts_ref, loss_ref):
            run(pts_ref, None, loss_ref)
    return kernel


def normal_vector_loss(coord_out, coord_gt, valid, face, *,
                       target_tile_sublanes=256, coords_bf16=False):
    """Pallas implementation of NormalVectorLoss.forward.

    coord_out, coord_gt: (B, V, 3) float
    valid: int / scalar (-> mask == 1) or (B, V, 1) float
    face: (F, 3) int array of vertex indices
    target_tile_sublanes: faces per grid step = target_tile_sublanes * 128
        (rounded to a multiple of 8; default 256 -> 32768 faces / ~5.7 MiB
        double-buffered VMEM per step).
    coords_bf16: transport the packed coordinates as bf16 (math stays f32);
        cuts HBM input traffic ~2x at the cost of input precision.
    returns: (B, 3*F, 1) float32
    """
    coord_out = coord_out.astype(jnp.float32)
    coord_gt = coord_gt.astype(jnp.float32)
    B, V, _ = coord_out.shape
    face = jnp.asarray(face, jnp.int32)
    Fn = int(face.shape[0])
    i0, i1, i2 = face[:, 0], face[:, 1], face[:, 2]

    tile_s, Fs = _face_tiling(B, Fn, target_tile_sublanes)
    Fp = Fs * 128
    pad = Fp - Fn

    def gather_pack(coord):
        # transpose the *small* (B, V, 3) array, gather along the last axis:
        # arrives directly in (B, 9, F) layout -> no large HBM transpose.
        ct = jnp.transpose(coord, (0, 2, 1))                                # (B, 3, V)
        return jnp.concatenate([ct[:, :, i0], ct[:, :, i1], ct[:, :, i2]], axis=1)

    # single merged operand: rows 0-8 = predicted p0/p1/p2 xyz, rows 9-17 = gt
    pts = jnp.concatenate([gather_pack(coord_out), gather_pack(coord_gt)], axis=1)
    pts = jnp.pad(pts, ((0, 0), (0, 0), (0, pad))).reshape(B, 18, Fs, 128)
    if coords_bf16:
        pts = pts.astype(jnp.bfloat16)

    use_mask = not _is_scalar_valid(valid)
    operands = [pts]
    in_specs = [pl.BlockSpec((1, 18, tile_s, 128), lambda b, f: (b, 0, f, 0))]
    if use_mask:
        v = jnp.asarray(valid, jnp.float32)[..., 0]                         # (B, V)
        mask2d = v[:, i0] * v[:, i1] * v[:, i2]                             # (B, Fn)
        mask = jnp.pad(mask2d, ((0, 0), (0, pad))).reshape(B, 1, Fs, 128)
        operands.append(mask.astype(jnp.bfloat16))                          # exact for {0,1}
        in_specs.append(pl.BlockSpec((1, 1, tile_s, 128), lambda b, f: (b, 0, f, 0)))

    # VMEM budget guard: only bump the scoped limit if a very large tile needs it
    # (keeps v5e's 16 MiB default safe at target_tile_sublanes >= 512).
    itemsize = 2 if coords_bf16 else 4
    bytes_per_step = (18 * itemsize + 3 * 4 + (2 if use_mask else 0)) * tile_s * 128
    extra_params = {}
    if 2 * bytes_per_step > (10 << 20):
        extra_params["vmem_limit_bytes"] = min(2 * bytes_per_step + (8 << 20), 30 << 20)

    kernel = _make_kernel(tile_s, use_mask)
    loss = pl.pallas_call(
        kernel,
        out_shape=jax.ShapeDtypeStruct((B, 3, Fs, 128), jnp.float32),
        grid=(B, Fs // tile_s),
        in_specs=in_specs,
        out_specs=pl.BlockSpec((1, 3, tile_s, 128), lambda b, f: (b, 0, f, 0)),
        compiler_params=pltpu.CompilerParams(
            dimension_semantics=("parallel", "parallel"),
            allow_input_fusion=[True] * len(operands),
            **extra_params),
    )(*operands)

    loss = loss.reshape(B, 3, Fp)
    if Fp != Fn:
        loss = loss[:, :, :Fn]                     # drop face padding (no-op if Fn % 128 == 0)
    return loss.reshape(B, 3 * Fn, 1)              # == torch.cat((c1, c2, c3), dim=1)


def _reference_jax(coord_out, coord_gt, valid, face):
    """Plain-JAX reference mirroring the PyTorch module (for verification)."""
    def norm(v):
        n = jnp.linalg.norm(v, axis=2, keepdims=True)
        return v / jnp.maximum(n, _EPS)

    face = jnp.asarray(face, jnp.int32)
    i0, i1, i2 = face[:, 0], face[:, 1], face[:, 2]
    v1o = norm(coord_out[:, i1, :] - coord_out[:, i0, :])
    v2o = norm(coord_out[:, i2, :] - coord_out[:, i0, :])
    v3o = norm(coord_out[:, i2, :] - coord_out[:, i1, :])
    v1g = norm(coord_gt[:, i1, :] - coord_gt[:, i0, :])
    v2g = norm(coord_gt[:, i2, :] - coord_gt[:, i0, :])
    ng = norm(jnp.cross(v1g, v2g, axis=2))
    if _is_scalar_valid(valid):
        vm = 1.0
    else:
        vm = valid[:, i0, :] * valid[:, i1, :] * valid[:, i2, :]
    c1 = jnp.abs(jnp.sum(v1o * ng, 2, keepdims=True)) * vm
    c2 = jnp.abs(jnp.sum(v2o * ng, 2, keepdims=True)) * vm
    c3 = jnp.abs(jnp.sum(v3o * ng, 2, keepdims=True)) * vm
    return jnp.concatenate([c1, c2, c3], axis=1)


if __name__ == "__main__":
    key = jax.random.PRNGKey(0)

    def make_face(Fn, V):
        idx = np.arange(Fn)
        return np.stack([idx % V, (idx + 5) % V, (idx + 11) % V], axis=1).astype(np.int32)

    def run_case(B, V, Fn, target_tile_sublanes):
        face = make_face(Fn, V)
        k1, k2, k3 = jax.random.split(jax.random.fold_in(key, Fn), 3)
        coord_out = jax.random.normal(k1, (B, V, 3), dtype=jnp.float32)
        coord_gt = jax.random.normal(k2, (B, V, 3), dtype=jnp.float32)
        valid = (jax.random.uniform(k3, (B, V, 1)) > 0.3).astype(jnp.float32)

        loss = jax.block_until_ready(
            normal_vector_loss(coord_out, coord_gt, valid, face,
                               target_tile_sublanes=target_tile_sublanes))
        assert loss.shape == (B, 3 * Fn, 1), loss.shape
        ref = _reference_jax(coord_out, coord_gt, valid, face)
        assert jnp.allclose(loss, ref, atol=1e-5, rtol=1e-5), "mismatch vs reference (mask path)"

        # valid passed as int -> mask-less kernel variant
        loss_int = jax.block_until_ready(
            normal_vector_loss(coord_out, coord_gt, 1, face,
                               target_tile_sublanes=target_tile_sublanes))
        ref_int = _reference_jax(coord_out, coord_gt, 1, face)
        assert loss_int.shape == (B, 3 * Fn, 1)
        assert jnp.allclose(loss_int, ref_int, atol=1e-5, rtol=1e-5), "mismatch (int-valid path)"

    # small case: single tiny full-extent face tile (Fs = 1)
    run_case(B=2, V=32, Fn=20, target_tile_sublanes=256)
    # tiled face axis with a tiny tile override (multi-tile grid, single-strip blocks)
    run_case(B=2, V=64, Fn=2000, target_tile_sublanes=8)
    # B == 1: tiling splits the face axis so the grid keeps >= 2 parallel steps
    run_case(B=1, V=64, Fn=3000, target_tile_sublanes=256)
    # larger mesh: one 160-sublane block per batch, exercises the rolled strip loop
    run_case(B=2, V=128, Fn=20000, target_tile_sublanes=256)

    # optional bf16 coordinate transport (smoke test with loose tolerance)
    face = make_face(500, 64)
    k1, k2 = jax.random.split(key)
    co = jax.random.normal(k1, (2, 64, 3), dtype=jnp.float32)
    cg = jax.random.normal(k2, (2, 64, 3), dtype=jnp.float32)
    lo = jax.block_until_ready(normal_vector_loss(co, cg, 1, face, coords_bf16=True))
    ref = _reference_jax(co, cg, 1, face)
    assert lo.shape == ref.shape and bool(jnp.all(jnp.isfinite(lo)))
    assert float(jnp.max(jnp.abs(lo - ref))) < 0.1, "bf16 transport diverged"

    print("KERNEL_OK")
</pallas_src>

<mosaic_0001>
module attributes {stable_mosaic.version = 11 : i64} {
  func.func @kernel(%arg0: i32, %arg1: i32, %arg2: memref<1x18x1x128xf32, #tpu.memory_space<vmem>>, %arg3: memref<1x1x1x128xbf16, #tpu.memory_space<vmem>>, %arg4: memref<1x3x1x128xf32, #tpu.memory_space<vmem>>) attributes {dimension_semantics = [#tpu.dimension_semantics<parallel>, #tpu.dimension_semantics<parallel>], iteration_bounds = array<i64: 2, 1>, scalar_prefetch = 0 : i64, scratch_operands = 0 : i64, tpu.core_type = #tpu.core_type<tc>, window_params = [{transform_indices = @transform_0, window_bounds = array<i64: 1, 18, 1, 128>}, {transform_indices = @transform_1, window_bounds = array<i64: 1, 1, 1, 128>}, {transform_indices = @transform_2, window_bounds = array<i64: 1, 3, 1, 128>}]} {
    %c0 = arith.constant 0 : index
    %c3 = arith.constant 3 : index
    %c0_0 = arith.constant 0 : index
    %c0_1 = arith.constant 0 : index
    %0 = vector.load %arg2[%c0, %c3, %c0_0, %c0_1] : memref<1x18x1x128xf32, #tpu.memory_space<vmem>>, vector<1x1x1x128xf32>
    %1 = vector.shape_cast %0 : vector<1x1x1x128xf32> to vector<1x128xf32>
    %c0_2 = arith.constant 0 : index
    %c0_3 = arith.constant 0 : index
    %c0_4 = arith.constant 0 : index
    %c0_5 = arith.constant 0 : index
    %2 = vector.load %arg2[%c0_2, %c0_3, %c0_4, %c0_5] : memref<1x18x1x128xf32, #tpu.memory_space<vmem>>, vector<1x1x1x128xf32>
    %3 = vector.shape_cast %2 : vector<1x1x1x128xf32> to vector<1x128xf32>
    %4 = arith.subf %1, %3 : vector<1x128xf32>
    %c0_6 = arith.constant 0 : index
    %c4 = arith.constant 4 : index
    %c0_7 = arith.constant 0 : index
    %c0_8 = arith.constant 0 : index
    %5 = vector.load %arg2[%c0_6, %c4, %c0_7, %c0_8] : memref<1x18x1x128xf32, #tpu.memory_space<vmem>>, vector<1x1x1x128xf32>
    %6 = vector.shape_cast %5 : vector<1x1x1x128xf32> to vector<1x128xf32>
    %c0_9 = arith.constant 0 : index
    %c1 = arith.constant 1 : index
    %c0_10 = arith.constant 0 : index
    %c0_11 = arith.constant 0 : index
    %7 = vector.load %arg2[%c0_9, %c1, %c0_10, %c0_11] : memref<1x18x1x128xf32, #tpu.memory_space<vmem>>, vector<1x1x1x128xf32>
    %8 = vector.shape_cast %7 : vector<1x1x1x128xf32> to vector<1x128xf32>
    %9 = arith.subf %6, %8 : vector<1x128xf32>
    %c0_12 = arith.constant 0 : index
    %c5 = arith.constant 5 : index
    %c0_13 = arith.constant 0 : index
    %c0_14 = arith.constant 0 : index
    %10 = vector.load %arg2[%c0_12, %c5, %c0_13, %c0_14] : memref<1x18x1x128xf32, #tpu.memory_space<vmem>>, vector<1x1x1x128xf32>
    %11 = vector.shape_cast %10 : vector<1x1x1x128xf32> to vector<1x128xf32>
    %c0_15 = arith.constant 0 : index
    %c2 = arith.constant 2 : index
    %c0_16 = arith.constant 0 : index
    %c0_17 = arith.constant 0 : index
    %12 = vector.load %arg2[%c0_15, %c2, %c0_16, %c0_17] : memref<1x18x1x128xf32, #tpu.memory_space<vmem>>, vector<1x1x1x128xf32>
    %13 = vector.shape_cast %12 : vector<1x1x1x128xf32> to vector<1x128xf32>
    %14 = arith.subf %11, %13 : vector<1x128xf32>
    %15 = arith.mulf %4, %4 : vector<1x128xf32>
    %16 = arith.mulf %9, %9 : vector<1x128xf32>
    %17 = arith.addf %15, %16 : vector<1x128xf32>
    %18 = arith.mulf %14, %14 : vector<1x128xf32>
    %19 = arith.addf %17, %18 : vector<1x128xf32>
    %cst = arith.constant 1.000000e-24 : f32
    %20 = vector.broadcast %cst : f32 to vector<1x128xf32>
    %21 = arith.maximumf %19, %20 : vector<1x128xf32>
    %22 = math.rsqrt %21 : vector<1x128xf32>
    %23 = arith.mulf %4, %22 : vector<1x128xf32>
    %24 = arith.mulf %9, %22 : vector<1x128xf32>
    %25 = arith.mulf %14, %22 : vector<1x128xf32>
    %c0_18 = arith.constant 0 : index
    %c6 = arith.constant 6 : index
    %c0_19 = arith.constant 0 : index
    %c0_20 = arith.constant 0 : index
    %26 = vector.load %arg2[%c0_18, %c6, %c0_19, %c0_20] : memref<1x18x1x128xf32, #tpu.memory_space<vmem>>, vector<1x1x1x128xf32>
    %27 = vector.shape_cast %26 : vector<1x1x1x128xf32> to vector<1x128xf32>
    %c0_21 = arith.constant 0 : index
    %c0_22 = arith.constant 0 : index
    %c0_23 = arith.constant 0 : index
    %c0_24 = arith.constant 0 : index
    %28 = vector.load %arg2[%c0_21, %c0_22, %c0_23, %c0_24] : memref<1x18x1x128xf32, #tpu.memory_space<vmem>>, vector<1x1x1x128xf32>
    %29 = vector.shape_cast %28 : vector<1x1x1x128xf32> to vector<1x128xf32>
    %30 = arith.subf %27, %29 : vector<1x128xf32>
    %c0_25 = arith.constant 0 : index
    %c7 = arith.constant 7 : index
    %c0_26 = arith.constant 0 : index
    %c0_27 = arith.constant 0 : index
    %31 = vector.load %arg2[%c0_25, %c7, %c0_26, %c0_27] : memref<1x18x1x128xf32, #tpu.memory_space<vmem>>, vector<1x1x1x128xf32>
    %32 = vector.shape_cast %31 : vector<1x1x1x128xf32> to vector<1x128xf32>
    %c0_28 = arith.constant 0 : index
    %c1_29 = arith.constant 1 : index
    %c0_30 = arith.constant 0 : index
    %c0_31 = arith.constant 0 : index
    %33 = vector.load %arg2[%c0_28, %c1_29, %c0_30, %c0_31] : memref<1x18x1x128xf32, #tpu.memory_space<vmem>>, vector<1x1x1x128xf32>
    %34 = vector.shape_cast %33 : vector<1x1x1x128xf32> to vector<1x128xf32>
    %35 = arith.subf %32, %34 : vector<1x128xf32>
    %c0_32 = arith.constant 0 : index
    %c8 = arith.constant 8 : index
    %c0_33 = arith.constant 0 : index
    %c0_34 = arith.constant 0 : index
    %36 = vector.load %arg2[%c0_32, %c8, %c0_33, %c0_34] : memref<1x18x1x128xf32, #tpu.memory_space<vmem>>, vector<1x1x1x128xf32>
    %37 = vector.shape_cast %36 : vector<1x1x1x128xf32> to vector<1x128xf32>
    %c0_35 = arith.constant 0 : index
    %c2_36 = arith.constant 2 : index
    %c0_37 = arith.constant 0 : index
    %c0_38 = arith.constant 0 : index
    %38 = vector.load %arg2[%c0_35, %c2_36, %c0_37, %c0_38] : memref<1x18x1x128xf32, #tpu.memory_space<vmem>>, vector<1x1x1x128xf32>
    %39 = vector.shape_cast %38 : vector<1x1x1x128xf32> to vector<1x128xf32>
    %40 = arith.subf %37, %39 : vector<1x128xf32>
    %41 = arith.mulf %30, %30 : vector<1x128xf32>
    %42 = arith.mulf %35, %35 : vector<1x128xf32>
    %43 = arith.addf %41, %42 : vector<1x128xf32>
    %44 = arith.mulf %40, %40 : vector<1x128xf32>
    %45 = arith.addf %43, %44 : vector<1x128xf32>
    %cst_39 = arith.constant 1.000000e-24 : f32
    %46 = vector.broadcast %cst_39 : f32 to vector<1x128xf32>
    %47 = arith.maximumf %45, %46 : vector<1x128xf32>
    %48 = math.rsqrt %47 : vector<1x128xf32>
    %49 = arith.mulf %30, %48 : vector<1x128xf32>
    %50 = arith.mulf %35, %48 : vector<1x128xf32>
    %51 = arith.mulf %40, %48 : vector<1x128xf32>
    %c0_40 = arith.constant 0 : index
    %c6_41 = arith.constant 6 : index
    %c0_42 = arith.constant 0 : index
    %c0_43 = arith.constant 0 : index
    %52 = vector.load %arg2[%c0_40, %c6_41, %c0_42, %c0_43] : memref<1x18x1x128xf32, #tpu.memory_space<vmem>>, vector<1x1x1x128xf32>
    %53 = vector.shape_cast %52 : vector<1x1x1x128xf32> to vector<1x128xf32>
    %c0_44 = arith.constant 0 : index
    %c3_45 = arith.constant 3 : index
    %c0_46 = arith.constant 0 : index
    %c0_47 = arith.constant 0 : index
    %54 = vector.load %arg2[%c0_44, %c3_45, %c0_46, %c0_47] : memref<1x18x1x128xf32, #tpu.memory_space<vmem>>, vector<1x1x1x128xf32>
    %55 = vector.shape_cast %54 : vector<1x1x1x128xf32> to vector<1x128xf32>
    %56 = arith.subf %53, %55 : vector<1x128xf32>
    %c0_48 = arith.constant 0 : index
    %c7_49 = arith.constant 7 : index
    %c0_50 = arith.constant 0 : index
    %c0_51 = arith.constant 0 : index
    %57 = vector.load %arg2[%c0_48, %c7_49, %c0_50, %c0_51] : memref<1x18x1x128xf32, #tpu.memory_space<vmem>>, vector<1x1x1x128xf32>
    %58 = vector.shape_cast %57 : vector<1x1x1x128xf32> to vector<1x128xf32>
    %c0_52 = arith.constant 0 : index
    %c4_53 = arith.constant 4 : index
    %c0_54 = arith.constant 0 : index
    %c0_55 = arith.constant 0 : index
    %59 = vector.load %arg2[%c0_52, %c4_53, %c0_54, %c0_55] : memref<1x18x1x128xf32, #tpu.memory_space<vmem>>, vector<1x1x1x128xf32>
    %60 = vector.shape_cast %59 : vector<1x1x1x128xf32> to vector<1x128xf32>
    %61 = arith.subf %58, %60 : vector<1x128xf32>
    %c0_56 = arith.constant 0 : index
    %c8_57 = arith.constant 8 : index
    %c0_58 = arith.constant 0 : index
    %c0_59 = arith.constant 0 : index
    %62 = vector.load %arg2[%c0_56, %c8_57, %c0_58, %c0_59] : memref<1x18x1x128xf32, #tpu.memory_space<vmem>>, vector<1x1x1x128xf32>
    %63 = vector.shape_cast %62 : vector<1x1x1x128xf32> to vector<1x128xf32>
    %c0_60 = arith.constant 0 : index
    %c5_61 = arith.constant 5 : index
    %c0_62 = arith.constant 0 : index
    %c0_63 = arith.constant 0 : index
    %64 = vector.load %arg2[%c0_60, %c5_61, %c0_62, %c0_63] : memref<1x18x1x128xf32, #tpu.memory_space<vmem>>, vector<1x1x1x128xf32>
    %65 = vector.shape_cast %64 : vector<1x1x1x128xf32> to vector<1x128xf32>
    %66 = arith.subf %63, %65 : vector<1x128xf32>
    %67 = arith.mulf %56, %56 : vector<1x128xf32>
    %68 = arith.mulf %61, %61 : vector<1x128xf32>
    %69 = arith.addf %67, %68 : vector<1x128xf32>
    %70 = arith.mulf %66, %66 : vector<1x128xf32>
    %71 = arith.addf %69, %70 : vector<1x128xf32>
    %cst_64 = arith.constant 1.000000e-24 : f32
    %72 = vector.broadcast %cst_64 : f32 to vector<1x128xf32>
    %73 = arith.maximumf %71, %72 : vector<1x128xf32>
    %74 = math.rsqrt %73 : vector<1x128xf32>
    %75 = arith.mulf %56, %74 : vector<1x128xf32>
    %76 = arith.mulf %61, %74 : vector<1x128xf32>
    %77 = arith.mulf %66, %74 : vector<1x128xf32>
    %c0_65 = arith.constant 0 : index
    %c12 = arith.constant 12 : index
    %c0_66 = arith.constant 0 : index
    %c0_67 = arith.constant 0 : index
    %78 = vector.load %arg2[%c0_65, %c12, %c0_66, %c0_67] : memref<1x18x1x128xf32, #tpu.memory_space<vmem>>, vector<1x1x1x128xf32>
    %79 = vector.shape_cast %78 : vector<1x1x1x128xf32> to vector<1x128xf32>
    %c0_68 = arith.constant 0 : index
    %c9 = arith.constant 9 : index
    %c0_69 = arith.constant 0 : index
    %c0_70 = arith.constant 0 : index
    %80 = vector.load %arg2[%c0_68, %c9, %c0_69, %c0_70] : memref<1x18x1x128xf32, #tpu.memory_space<vmem>>, vector<1x1x1x128xf32>
    %81 = vector.shape_cast %80 : vector<1x1x1x128xf32> to vector<1x128xf32>
    %82 = arith.subf %79, %81 : vector<1x128xf32>
    %c0_71 = arith.constant 0 : index
    %c13 = arith.constant 13 : index
    %c0_72 = arith.constant 0 : index
    %c0_73 = arith.constant 0 : index
    %83 = vector.load %arg2[%c0_71, %c13, %c0_72, %c0_73] : memref<1x18x1x128xf32, #tpu.memory_space<vmem>>, vector<1x1x1x128xf32>
    %84 = vector.shape_cast %83 : vector<1x1x1x128xf32> to vector<1x128xf32>
    %c0_74 = arith.constant 0 : index
    %c10 = arith.constant 10 : index
    %c0_75 = arith.constant 0 : index
    %c0_76 = arith.constant 0 : index
    %85 = vector.load %arg2[%c0_74, %c10, %c0_75, %c0_76] : memref<1x18x1x128xf32, #tpu.memory_space<vmem>>, vector<1x1x1x128xf32>
    %86 = vector.shape_cast %85 : vector<1x1x1x128xf32> to vector<1x128xf32>
    %87 = arith.subf %84, %86 : vector<1x128xf32>
    %c0_77 = arith.constant 0 : index
    %c14 = arith.constant 14 : index
    %c0_78 = arith.constant 0 : index
    %c0_79 = arith.constant 0 : index
    %88 = vector.load %arg2[%c0_77, %c14, %c0_78, %c0_79] : memref<1x18x1x128xf32, #tpu.memory_space<vmem>>, vector<1x1x1x128xf32>
    %89 = vector.shape_cast %88 : vector<1x1x1x128xf32> to vector<1x128xf32>
    %c0_80 = arith.constant 0 : index
    %c11 = arith.constant 11 : index
    %c0_81 = arith.constant 0 : index
    %c0_82 = arith.constant 0 : index
    %90 = vector.load %arg2[%c0_80, %c11, %c0_81, %c0_82] : memref<1x18x1x128xf32, #tpu.memory_space<vmem>>, vector<1x1x1x128xf32>
    %91 = vector.shape_cast %90 : vector<1x1x1x128xf32> to vector<1x128xf32>
    %92 = arith.subf %89, %91 : vector<1x128xf32>
    %93 = arith.mulf %82, %82 : vector<1x128xf32>
    %94 = arith.mulf %87, %87 : vector<1x128xf32>
    %95 = arith.addf %93, %94 : vector<1x128xf32>
    %96 = arith.mulf %92, %92 : vector<1x128xf32>
    %97 = arith.addf %95, %96 : vector<1x128xf32>
    %cst_83 = arith.constant 1.000000e-24 : f32
    %98 = vector.broadcast %cst_83 : f32 to vector<1x128xf32>
    %99 = arith.maximumf %97, %98 : vector<1x128xf32>
    %100 = math.rsqrt %99 : vector<1x128xf32>
    %101 = arith.mulf %82, %100 : vector<1x128xf32>
    %102 = arith.mulf %87, %100 : vector<1x128xf32>
    %103 = arith.mulf %92, %100 : vector<1x128xf32>
    %c0_84 = arith.constant 0 : index
    %c15 = arith.constant 15 : index
    %c0_85 = arith.constant 0 : index
    %c0_86 = arith.constant 0 : index
    %104 = vector.load %arg2[%c0_84, %c15, %c0_85, %c0_86] : memref<1x18x1x128xf32, #tpu.memory_space<vmem>>, vector<1x1x1x128xf32>
    %105 = vector.shape_cast %104 : vector<1x1x1x128xf32> to vector<1x128xf32>
    %c0_87 = arith.constant 0 : index
    %c9_88 = arith.constant 9 : index
    %c0_89 = arith.constant 0 : index
    %c0_90 = arith.constant 0 : index
    %106 = vector.load %arg2[%c0_87, %c9_88, %c0_89, %c0_90] : memref<1x18x1x128xf32, #tpu.memory_space<vmem>>, vector<1x1x1x128xf32>
    %107 = vector.shape_cast %106 : vector<1x1x1x128xf32> to vector<1x128xf32>
    %108 = arith.subf %105, %107 : vector<1x128xf32>
    %c0_91 = arith.constant 0 : index
    %c16 = arith.constant 16 : index
    %c0_92 = arith.constant 0 : index
    %c0_93 = arith.constant 0 : index
    %109 = vector.load %arg2[%c0_91, %c16, %c0_92, %c0_93] : memref<1x18x1x128xf32, #tpu.memory_space<vmem>>, vector<1x1x1x128xf32>
    %110 = vector.shape_cast %109 : vector<1x1x1x128xf32> to vector<1x128xf32>
    %c0_94 = arith.constant 0 : index
    %c10_95 = arith.constant 10 : index
    %c0_96 = arith.constant 0 : index
    %c0_97 = arith.constant 0 : index
    %111 = vector.load %arg2[%c0_94, %c10_95, %c0_96, %c0_97] : memref<1x18x1x128xf32, #tpu.memory_space<vmem>>, vector<1x1x1x128xf32>
    %112 = vector.shape_cast %111 : vector<1x1x1x128xf32> to vector<1x128xf32>
    %113 = arith.subf %110, %112 : vector<1x128xf32>
    %c0_98 = arith.constant 0 : index
    %c17 = arith.constant 17 : index
    %c0_99 = arith.constant 0 : index
    %c0_100 = arith.constant 0 : index
    %114 = vector.load %arg2[%c0_98, %c17, %c0_99, %c0_100] : memref<1x18x1x128xf32, #tpu.memory_space<vmem>>, vector<1x1x1x128xf32>
    %115 = vector.shape_cast %114 : vector<1x1x1x128xf32> to vector<1x128xf32>
    %c0_101 = arith.constant 0 : index
    %c11_102 = arith.constant 11 : index
    %c0_103 = arith.constant 0 : index
    %c0_104 = arith.constant 0 : index
    %116 = vector.load %arg2[%c0_101, %c11_102, %c0_103, %c0_104] : memref<1x18x1x128xf32, #tpu.memory_space<vmem>>, vector<1x1x1x128xf32>
    %117 = vector.shape_cast %116 : vector<1x1x1x128xf32> to vector<1x128xf32>
    %118 = arith.subf %115, %117 : vector<1x128xf32>
    %119 = arith.mulf %108, %108 : vector<1x128xf32>
    %120 = arith.mulf %113, %113 : vector<1x128xf32>
    %121 = arith.addf %119, %120 : vector<1x128xf32>
    %122 = arith.mulf %118, %118 : vector<1x128xf32>
    %123 = arith.addf %121, %122 : vector<1x128xf32>
    %cst_105 = arith.constant 1.000000e-24 : f32
    %124 = vector.broadcast %cst_105 : f32 to vector<1x128xf32>
    %125 = arith.maximumf %123, %124 : vector<1x128xf32>
    %126 = math.rsqrt %125 : vector<1x128xf32>
    %127 = arith.mulf %108, %126 : vector<1x128xf32>
    %128 = arith.mulf %113, %126 : vector<1x128xf32>
    %129 = arith.mulf %118, %126 : vector<1x128xf32>
    %130 = arith.mulf %102, %129 : vector<1x128xf32>
    %131 = arith.mulf %103, %128 : vector<1x128xf32>
    %132 = arith.subf %130, %131 : vector<1x128xf32>
    %133 = arith.mulf %103, %127 : vector<1x128xf32>
    %134 = arith.mulf %101, %129 : vector<1x128xf32>
    %135 = arith.subf %133, %134 : vector<1x128xf32>
    %136 = arith.mulf %101, %128 : vector<1x128xf32>
    %137 = arith.mulf %102, %127 : vector<1x128xf32>
    %138 = arith.subf %136, %137 : vector<1x128xf32>
    %139 = arith.mulf %132, %132 : vector<1x128xf32>
    %140 = arith.mulf %135, %135 : vector<1x128xf32>
    %141 = arith.addf %139, %140 : vector<1x128xf32>
    %142 = arith.mulf %138, %138 : vector<1x128xf32>
    %143 = arith.addf %141, %142 : vector<1x128xf32>
    %cst_106 = arith.constant 1.000000e-24 : f32
    %144 = vector.broadcast %cst_106 : f32 to vector<1x128xf32>
    %145 = arith.maximumf %143, %144 : vector<1x128xf32>
    %146 = math.rsqrt %145 : vector<1x128xf32>
    %147 = arith.mulf %132, %146 : vector<1x128xf32>
    %148 = arith.mulf %135, %146 : vector<1x128xf32>
    %149 = arith.mulf %138, %146 : vector<1x128xf32>
    %150 = arith.mulf %23, %147 : vector<1x128xf32>
    %151 = arith.mulf %24, %148 : vector<1x128xf32>
    %152 = arith.addf %150, %151 : vector<1x128xf32>
    %153 = arith.mulf %25, %149 : vector<1x128xf32>
    %154 = arith.addf %152, %153 : vector<1x128xf32>
    %155 = math.absf %154 : vector<1x128xf32>
    %156 = arith.mulf %49, %147 : vector<1x128xf32>
    %157 = arith.mulf %50, %148 : vector<1x128xf32>
    %158 = arith.addf %156, %157 : vector<1x128xf32>
    %159 = arith.mulf %51, %149 : vector<1x128xf32>
    %160 = arith.addf %158, %159 : vector<1x128xf32>
    %161 = math.absf %160 : vector<1x128xf32>
    %162 = arith.mulf %75, %147 : vector<1x128xf32>
    %163 = arith.mulf %76, %148 : vector<1x128xf32>
    %164 = arith.addf %162, %163 : vector<1x128xf32>
    %165 = arith.mulf %77, %149 : vector<1x128xf32>
    %166 = arith.addf %164, %165 : vector<1x128xf32>
    %167 = math.absf %166 : vector<1x128xf32>
    %c0_107 = arith.constant 0 : index
    %c0_108 = arith.constant 0 : index
    %c0_109 = arith.constant 0 : index
    %c0_110 = arith.constant 0 : index
    %168 = vector.load %arg3[%c0_107, %c0_108, %c0_109, %c0_110] : memref<1x1x1x128xbf16, #tpu.memory_space<vmem>>, vector<1x1x1x128xbf16>
    %169 = vector.shape_cast %168 : vector<1x1x1x128xbf16> to vector<1x128xbf16>
    %170 = arith.extf %169 : vector<1x128xbf16> to vector<1x128xf32>
    %171 = arith.mulf %155, %170 : vector<1x128xf32>
    %172 = arith.mulf %161, %170 : vector<1x128xf32>
    %173 = arith.mulf %167, %170 : vector<1x128xf32>
    %c0_111 = arith.constant 0 : index
    %c0_112 = arith.constant 0 : index
    %c0_113 = arith.constant 0 : index
    %c0_114 = arith.constant 0 : index
    %174 = vector.load %arg4[%c0_111, %c0_112, %c0_113, %c0_114] : memref<1x3x1x128xf32, #tpu.memory_space<vmem>>, vector<1x1x1x128xf32>
    %175 = vector.shape_cast %174 : vector<1x1x1x128xf32> to vector<1x128xf32>
    %176 = vector.shape_cast %171 : vector<1x128xf32> to vector<1x1x1x128xf32>
    tpu.vector_store %arg4[%c0_111, %c0_112, %c0_113, %c0_114], %176 {strides = array<i32>} : memref<1x3x1x128xf32, #tpu.memory_space<vmem>>, vector<1x1x1x128xf32>,
    %c0_115 = arith.constant 0 : index
    %c1_116 = arith.constant 1 : index
    %c0_117 = arith.constant 0 : index
    %c0_118 = arith.constant 0 : index
    %177 = vector.load %arg4[%c0_115, %c1_116, %c0_117, %c0_118] : memref<1x3x1x128xf32, #tpu.memory_space<vmem>>, vector<1x1x1x128xf32>
    %178 = vector.shape_cast %177 : vector<1x1x1x128xf32> to vector<1x128xf32>
    %179 = vector.shape_cast %172 : vector<1x128xf32> to vector<1x1x1x128xf32>
    tpu.vector_store %arg4[%c0_115, %c1_116, %c0_117, %c0_118], %179 {strides = array<i32>} : memref<1x3x1x128xf32, #tpu.memory_space<vmem>>, vector<1x1x1x128xf32>,
    %c0_119 = arith.constant 0 : index
    %c2_120 = arith.constant 2 : index
    %c0_121 = arith.constant 0 : index
    %c0_122 = arith.constant 0 : index
    %180 = vector.load %arg4[%c0_119, %c2_120, %c0_121, %c0_122] : memref<1x3x1x128xf32, #tpu.memory_space<vmem>>, vector<1x1x1x128xf32>
    %181 = vector.shape_cast %180 : vector<1x1x1x128xf32> to vector<1x128xf32>
    %182 = vector.shape_cast %173 : vector<1x128xf32> to vector<1x1x1x128xf32>
    tpu.vector_store %arg4[%c0_119, %c2_120, %c0_121, %c0_122], %182 {strides = array<i32>} : memref<1x3x1x128xf32, #tpu.memory_space<vmem>>, vector<1x1x1x128xf32>,
    return
  }
  func.func @transform_0(%arg0: i32, %arg1: i32) -> (i32, i32, i32, i32) {
    %c0_i32 = arith.constant 0 : i32
    %c0_i32_0 = arith.constant 0 : i32
    %c0_i32_1 = arith.constant 0 : i32
    return %arg0, %c0_i32, %arg1, %c0_i32_0 : i32, i32, i32, i32
  }
  func.func @transform_1(%arg0: i32, %arg1: i32) -> (i32, i32, i32, i32) {
    %c0_i32 = arith.constant 0 : i32
    %c0_i32_0 = arith.constant 0 : i32
    %c0_i32_1 = arith.constant 0 : i32
    return %arg0, %c0_i32, %arg1, %c0_i32_0 : i32, i32, i32, i32
  }
  func.func @transform_2(%arg0: i32, %arg1: i32) -> (i32, i32, i32, i32) {
    %c0_i32 = arith.constant 0 : i32
    %c0_i32_0 = arith.constant 0 : i32
    %c0_i32_1 = arith.constant 0 : i32
    return %arg0, %c0_i32, %arg1, %c0_i32_0 : i32, i32, i32, i32
  }
}

</mosaic_0001>

<bundles_post_ra>
// kernel: tpu_custom_call.1
= control target key start
LH: loop header
LB: loop body
LE: loop exit
PB: predicated region body
PF: predicated region fallthrough
CT: control target
= control target key end

     0   :  { %7 = vsyncpa [#allocation3], 0  ;;  %s920_s0 = inlined_call_operand.hbm [shape: f32[2,18,1,128], index: 0, kind: input, shape index: {}]   ;;  %s921_s1 = inlined_call_operand.vmem [shape: bf16[2,1,1,128], index: 1, kind: input, shape index: {}]   ;;  %s922_s2 = inlined_call_operand.hbm [shape: f32[2,3,1,128], index: 2, kind: output, shape index: {}]  }
   0x1   :  { %9 = vsyncpa [#allocation3 + $0x1], 0 }
   0x2   :  { %10 = vsyncpa [#allocation4], 0 }
   0x3   :  { %12 = vsyncpa [#allocation4 + $0x1], 0  ;;  %s709_s9 = smov 0   ;;  %s711_s10 = smov 0  }
   0x4   :  { %s713_s11 = smov 0   ;;  %s715_s12 = smov 0  }
   0x5   :  { %s717_s13 = smov 0   ;;  %s719_s14 = smov 0  }
   0x6 LB: > { %s463_s15 = sadd.s32 4294967295, %s686_s14   ;;  %s464_s16 = sadd.s32 4294967294, %s686_s14   ;;  %s686_s14 = sphi %s719_s14, %s18_s14   ;;  %s682_s13 = sphi %s717_s13, %s937_s13   ;;  %s678_s12 = sphi %s715_s12, %s936_s12   ;;  %s674_s11 = sphi %s713_s11, %s935_s11   ;;  %s670_s10 = sphi %s711_s10, %s934_s10   ;;  %s666_s9 = sphi %s709_s9, %s933_s9  }
   0x7   : > { %s30_s17 = sadd.s32 1, %s682_s13  ;;  %s39_s18 = sadd.s32 1, %s674_s11 }
   0x8   : > { %p32_p0 = scmp.ge.s32.totalorder %s30_s17, 2  ;;  %p46_p1 = scmp.ne.s32.totalorder %s674_s11, %s670_s10 }
   0x9   : > { %p47_p2 = scmp.eq.s32.totalorder %s686_s14, 0  ;;  %p52_p3 = scmp.ne.s32.totalorder %s670_s10, %s666_s9 }
   0xa   : > { %s939_s17 = smov (%p32_p0, %s30_s17), 0  ;;  %p53_p5 = scmp.eq.s32.totalorder %s463_s15, 0 }
   0xb   : > { %p750_p4 = por %p47_p2, %p46_p1  ;;  %s34_s20 = ssub.s32 %s682_s13, %s939_s17 }
   0xc   : > { %p106_p6 = scmp.eq.s32.totalorder %s463_s15, 1  ;;  %p37_p7 = scmp.eq.s32.totalorder %s34_s20, 0 }
   0xd   : > { %p756_p8 = por %p53_p5, %p52_p3  ;;  %p112_p10 = scmp.eq.s32.totalorder %s464_s16, 1 }
   0xe   : > { %p760_p9 = por %p106_p6, %p46_p1  ;;  %p508_p13 = scmp.lt.s32.totalorder %s686_s14, 2 }
   0xf   : > { %s765_s23 = scalar_select %p37_p7, %s674_s11, %s39_s18  }
  0x10   : > { %s926_s22 = scalar_select %p760_p9, 1, 0 }
  0x11   : > { %p767_p11 = por %p112_p10, %p52_p3  ;;  %s132_s25 = sand.u32 1, %s674_s11  }
  0x12   : > { %s491_s26 = smul.u32 18, %s132_s25  ;;  %p777_p0 = pnand %p508_p13, %p750_p4 }
  0x13   : > { %s927_s24 = scalar_select %p767_p11, 1, 0 }
  0x14   : > { %s492_s27 = smul.u32 288, %s682_s13  ;;  %s136_s4 = scalar_lea.vmem [#allocation2], %s491_s26 }
  0x15   : > { %s144_s5 = sshll.u32 %s136_s4, 4  ;;  %s789_s6 = scalar_lea.sflag [#allocation3], %s132_s25  ;;  %s786_s5 = int_to_ptr.vmem [resolvable:$true] %s144_s5 }
  0x16   : > { %s784_s3 = scalar_lea.hbm %s920_s0, %s492_s27  ;;  %p576_p3 = pneg %p777_p0 }
  0x17   : > { %s574_s7 = scalar_lea.hbm %s784_s3, 288  ;;  %s579_s16 = scalar_lea.hbm %s920_s0, 576 }
  0x18   : > { %p575_p2 = scmp.ne.s32.totalorder %s784_s3, %s574_s7  ;;  %p580_p6 = scmp.lt.u32.totalorder %s784_s3, %s920_s0 }
  0x19   : > { %p581_p7 = scmp.lt.u32.totalorder %s579_s16, %s574_s7  ;;  %p583_p13 = scmp.lt.u32.totalorder %s574_s7, %s784_s3 }
  0x1a   : > { %p577_p4 = pnand %p576_p3, %p575_p2 }
  0x1b   : > { %p582_p10 = por %p581_p7, %p580_p6 }
  0x1c   : > { %p578_p5 = pneg %p577_p4 }
  0x1d   : > { %p584_p12 = por %p583_p13, %p582_p10 }
  0x1f   : > { %p585_p1 = pnand %p584_p12, %p578_p5 }
  0x21   : > { %588 = shalt.err (!%p585_p1)
}
  0x22   : > { %s589_s20 = scalar_lea.vmem %s786_s5, 288  ;;  %s688_s25 = smov [#allocation2]  }
  0x23   : > { %p590_p2 = scmp.ne.s32.totalorder %s786_s5, %s589_s20  ;;  %s594_s26 = sshll.u32 %s688_s25, 4  ;;  %s595_s26 = int_to_ptr.vmem [resolvable:$false] %s594_s26 }
  0x24   : > { %s596_s27 = scalar_lea.vmem %s595_s26, 576  ;;  %p597_p9 = scmp.lt.s32.totalorder %s786_s5, %s595_s26 }
  0x25   : > { %p592_p4 = pnand %p590_p2, %p576_p3  ;;  %p598_p6 = scmp.lt.s32.totalorder %s596_s27, %s589_s20 }
  0x27   : > { %p593_p11 = pneg %p592_p4  ;;  %p599_p7 = por %p598_p6, %p597_p9 }
  0x29   : > { %p600_p10 = pnand %p599_p7, %p593_p11 }
  0x2b   : > { %603 = shalt.err (!%p600_p10)
}
  0x2c   : > { %s689_s29 = smov 16   ;;  %s690_s30 = smov 1  }
  0x2d   : > { %503 = dma.hbm_to_vmem [thread:$0]  (!%p777_p0), %s784_s3, 288, %s786_s5, %s789_s6, %s689_s29, %s689_s29, %s690_s30  }
  0x2e   : > { %p161_p12 = scmp.lt.s32.totalorder %s686_s14, 3  ;;  %p929_p1 = scmp.ge.s32.totalorder %s686_s14, 1 }
  0x30   : > { %p162_p3 = pnand %p929_p1, %p161_p12 }
  0x31   : > { %s821_s4 = sand.u32 (!%p162_p3), 1, %s670_s10  }
  0x32   : > { %165 = sbr.rel (%p162_p3) target bundleno = 135 (0x87), region = 28  ;;  %s168_s8 = scalar_lea.sflag (!%p162_p3), [#allocation3], %s821_s4 }
  0x33   : > { %s493_s7 = smul.u32 (!%p162_p3), 18, %s821_s4 }
  0x35   : > { %s825_s15 = scalar_lea.vmem (!%p162_p3), [#allocation2], %s493_s7 }
  0x39   : > { %657 = dma.done.wait (%p756_p8), %s168_s8, 288  }
  0x3a   : > { %659 = vsyncadd (%p756_p8), %s168_s8, 4294967008  ;;  %v477_v0 = vld [vmem:[%s825_s15 + $0xc] sm:$0x1]  ;;  %v478_v1 = vld [vmem:[%s825_s15 + $0x9] sm:$0x1]  ;;  %p198_p8 = scmp.lt.s32.totalorder %s678_s12, 1 }
  0x3b   : > { %v479_v2 = vld [vmem:[%s825_s15 + $0xd] sm:$0x1]  ;;  %v264_v3 = vsub.f32 %v477_v0, %v478_v1  ;;  %v480_v4 = vld [vmem:[%s825_s15 + $0xa] sm:$0x1]  ;;  %v481_v5 = vld [vmem:[%s825_s15 + $0xe] sm:$0x1] }
  0x3c   : > { %v482_v6 = vld [vmem:[%s825_s15 + $0xb] sm:$0x1]  ;;  %v269_v7 = vsub.f32 %v479_v2, %v480_v4  ;;  %v483_v9 = vld [vmem:[%s825_s15 + $0xf] sm:$0x1]  ;;  %v484_v10 = vld [vmem:[%s825_s15 + $0x10] sm:$0x1] }
  0x3d   : > { %v274_v8 = vsub.f32 %v481_v5, %v482_v6  ;;  %v485_v11 = vld [vmem:[%s825_s15 + $0x11] sm:$0x1]  ;;  %v275_v12 = vmul.f32 %v264_v3, %v264_v3  ;;  %v287_v13 = vsub.f32 %v483_v9, %v478_v1  ;;  %v290_v14 = vsub.f32 %v484_v10, %v480_v4  ;;  %v469_v23 = vld [vmem:[%s825_s15 + $0x3] sm:$0x1]  ;;  %v206_v25 = vld [vmem:[%s825_s15] sm:$0x1] }
  0x3e   : > { %v293_v15 = vsub.f32 %v485_v11, %v482_v6  ;;  %v276_v16 = vmul.f32 %v269_v7, %v269_v7  ;;  %v470_v26 = vld [vmem:[%s825_s15 + $0x4] sm:$0x1]  ;;  %v471_v27 = vld [vmem:[%s825_s15 + $0x1] sm:$0x1]  ;;  %v474_v30 = vld [vmem:[%s825_s15 + $0x6] sm:$0x1]  ;;  %v846_v33 = vsub.f32 %v469_v23, %v206_v25 }
  0x3f   : > { %v278_v17 = vmul.f32 %v274_v8, %v274_v8  ;;  %v294_v18 = vmul.f32 %v287_v13, %v287_v13  ;;  %v295_v19 = vmul.f32 %v290_v14, %v290_v14  ;;  %v475_v31 = vld [vmem:[%s825_s15 + $0x7] sm:$0x1]  ;;  %v848_v34 = vsub.f32 %v470_v26, %v471_v27  ;;  %v472_v35 = vld [vmem:[%s825_s15 + $0x5] sm:$0x1]  ;;  %v473_v36 = vld [vmem:[%s825_s15 + $0x2] sm:$0x1] }
  0x40   : > { %v297_v20 = vmul.f32 %v293_v15, %v293_v15  ;;  %v277_v21 = vadd.f32 %v276_v16, %v275_v12  ;;  %v230_v37 = vsub.f32 %v474_v30, %v206_v25  ;;  %v233_v38 = vsub.f32 %v475_v31, %v471_v27  ;;  %v476_v39 = vld [vmem:[%s825_s15 + $0x8] sm:$0x1]  ;;  %s199_s21 = scalar_select %p198_p8, %s678_s12, 1 }
  0x41   : > { %v296_v22 = vadd.f32 %v295_v19, %v294_v18  ;;  %v247_v40 = vsub.f32 %v474_v30, %v469_v23  ;;  %v248_v41 = vsub.f32 %v475_v31, %v470_v26  ;;  %v217_v42 = vsub.f32 %v472_v35, %v473_v36  ;;  %s494_s6 = smul.u32 3, %s821_s4  ;;  %p930_p11 = scmp.ne.s32.totalorder %s926_s22, 0 }
  0x42   : > { %v279_v24 = vadd.f32 %v278_v17, %v277_v21  ;;  %v218_v43 = vmul.f32 %v846_v33, %v846_v33  ;;  %v219_v44 = vmul.f32 %v848_v34, %v848_v34  ;;  %v236_v45 = vsub.f32 %v476_v39, %v473_v36  ;;  %s203_s5 = scalar_lea.vmem %s921_s1, %s199_s21  ;;  %s495_s16 = smul.u32 48, %s678_s12 }
  0x43   : > { %v298_v28 = vadd.f32 %v297_v20, %v296_v22  ;;  %v237_v46 = vmul.f32 %v230_v37, %v230_v37  ;;  %v238_v47 = vmul.f32 %v233_v38, %v233_v38  ;;  %v250_v48 = vmul.f32 %v247_v40, %v247_v40  ;;  %s197_s18 = scalar_lea.vmem [#allocation5], %s494_s6  ;;  %s352_s12 = scalar_lea.sflag [#allocation4], %s821_s4 }
  0x44   : > { %v280_v29 = vmax.f32 %v279_v24, 1e-24  ;;  %v251_v49 = vmul.f32 %v248_v41, %v248_v41  ;;  %v249_v50 = vsub.f32 %v476_v39, %v472_v35  ;;  %v220_v51 = vadd.f32 %v219_v44, %v218_v43  ;;  %s366_s19 = sshll.u32 %s197_s18, 4  ;;  %s869_s26 = scalar_lea.hbm %s922_s2, %s495_s16  ;;  %s871_s19 = int_to_ptr.vmem [resolvable:$true] %s366_s19 }
  0x45   : > { %v299_v32 = vmax.f32 %v298_v28, 1e-24  ;;  %v221_v52 = vmul.f32 %v217_v42, %v217_v42  ;;  %v239_v53 = vadd.f32 %v238_v47, %v237_v46  ;;  %v240_v54 = vmul.f32 %v236_v45, %v236_v45  ;;  %s604_s27 = scalar_lea.vmem %s871_s19, 48  ;;  %s691_s29 = smov [#allocation5]  }
  0x46   : > { %562 = vrsqrt.f32 %v280_v29  ;;  %v252_v56 = vadd.f32 %v251_v49, %v250_v48  ;;  %v253_v61 = vmul.f32 %v249_v50, %v249_v50  ;;  %p605_p9 = scmp.ne.s32.totalorder %s871_s19, %s604_s27  ;;  %s608_s30 = sshll.u32 %s691_s29, 4  ;;  %s609_s30 = int_to_ptr.vmem [resolvable:$false] %s608_s30 }
  0x47   : > { %564 = vrsqrt.f32 %v299_v32  ;;  %v222_v1 = vadd.f32 %v221_v52, %v220_v51  ;;  %v241_v2 = vadd.f32 %v240_v54, %v239_v53  ;;  %s610_s7 = scalar_lea.vmem %s609_s30, 96  ;;  %p611_p13 = scmp.lt.s32.totalorder %s871_s19, %s609_s30 }
  0x48   : > { %v254_v12 = vadd.f32 %v253_v61, %v252_v56  ;;  %p606_p0 = pnand %p605_p9, %p930_p11  ;;  %p612_p2 = scmp.lt.s32.totalorder %s610_s7, %s604_s27 }
  0x49   : > { %v223_v18 = vmax.f32 %v222_v1, 1e-24 }
  0x4a   : > { %p607_p5 = pneg %p606_p0  ;;  %p613_p4 = por %p612_p2, %p611_p13 }
  0x4b   : > { %566 = vrsqrt.f32 %v223_v18 }
  0x4c   : > { %p614_p6 = pnand %p613_p4, %p607_p5 }
  0x50   : > { %v563_v55 = vpop.eup %562 }
  0x51   : > { %v565_v57 = vpop.eup %564  ;;  %v282_v58 = vmul.f32 %v563_v55, %v264_v3  ;;  %v283_v59 = vmul.f32 %v563_v55, %v269_v7  ;;  %v284_v60 = vmul.f32 %v563_v55, %v274_v8 }
  0x52   : > { %v301_v62 = vmul.f32 %v565_v57, %v287_v13  ;;  %v302_v63 = vmul.f32 %v565_v57, %v290_v14  ;;  %v303_v0 = vmul.f32 %v565_v57, %v293_v15  ;;  %v242_v13 = vmax.f32 %v241_v2, 1e-24 }
  0x53   : > { %v255_v15 = vmax.f32 %v254_v12, 1e-24 }
  0x54   : > { %v304_v4 = vmul.f32 %v303_v0, %v283_v59  ;;  %v305_v5 = vmul.f32 %v302_v63, %v284_v60  ;;  %v307_v6 = vmul.f32 %v301_v62, %v284_v60  ;;  %v308_v9 = vmul.f32 %v303_v0, %v282_v58 }
  0x55   : > { %v310_v10 = vmul.f32 %v302_v63, %v282_v58  ;;  %v311_v11 = vmul.f32 %v301_v62, %v283_v59  ;;  %568 = vrsqrt.f32 %v242_v13  ;;  %v567_v22 = vpop.eup %566 }
  0x56   : > { %v306_v16 = vsub.f32 %v304_v4, %v305_v5  ;;  %v309_v17 = vsub.f32 %v307_v6, %v308_v9  ;;  %570 = vrsqrt.f32 %v255_v15  ;;  %v225_v25 = vmul.f32 %v567_v22, %v846_v33 }
  0x57   : > { %v312_v3 = vsub.f32 %v310_v10, %v311_v11  ;;  %v226_v26 = vmul.f32 %v567_v22, %v848_v34  ;;  %v227_v27 = vmul.f32 %v567_v22, %v217_v42 }
  0x58   : > { %v313_v7 = vmul.f32 %v306_v16, %v306_v16  ;;  %v314_v8 = vmul.f32 %v309_v17, %v309_v17 }
  0x59   : > { %v316_v14 = vmul.f32 %v312_v3, %v312_v3 }
  0x5a   : > { %v315_v19 = vadd.f32 %v314_v8, %v313_v7 }
  0x5c   : > { %v317_v20 = vadd.f32 %v316_v14, %v315_v19 }
  0x5e   : > { %v318_v21 = vmax.f32 %v317_v20, 1e-24 }
  0x5f   : > { %v569_v23 = vpop.eup %568 }
  0x60   : > { %572 = vrsqrt.f32 %v318_v21  ;;  %v571_v24 = vpop.eup %570  ;;  %v244_v28 = vmul.f32 %v569_v23, %v230_v37  ;;  %v245_v30 = vmul.f32 %v569_v23, %v233_v38  ;;  %v246_v31 = vmul.f32 %v569_v23, %v236_v45  ;;  %v341_v37 = vld [vmem:[%s203_s5] sm:$0x1] }
  0x61   : > { %v257_v32 = vmul.f32 %v571_v24, %v247_v40  ;;  %v258_v35 = vmul.f32 %v571_v24, %v248_v41  ;;  %v259_v44 = vmul.f32 %v571_v24, %v249_v50  ;;  %v342_v53 = vunpack.c.l.bf16 %v341_v37 }
  0x6a   : > { %v573_v29 = vpop.eup %572 }
  0x6b   : > { %v320_v36 = vmul.f32 %v573_v29, %v306_v16  ;;  %v321_v39 = vmul.f32 %v573_v29, %v309_v17  ;;  %v322_v43 = vmul.f32 %v573_v29, %v312_v3 }
  0x6d   : > { %v323_v33 = vmul.f32 %v320_v36, %v225_v25  ;;  %v324_v46 = vmul.f32 %v321_v39, %v226_v26  ;;  %v326_v34 = vmul.f32 %v322_v43, %v227_v27  ;;  %v329_v42 = vmul.f32 %v320_v36, %v244_v28 }
  0x6e   : > { %v330_v47 = vmul.f32 %v321_v39, %v245_v30  ;;  %v332_v38 = vmul.f32 %v322_v43, %v246_v31  ;;  %v335_v45 = vmul.f32 %v320_v36, %v257_v32  ;;  %v336_v40 = vmul.f32 %v321_v39, %v258_v35 }
  0x6f   : > { %v325_v41 = vadd.f32 %v324_v46, %v323_v33  ;;  %v338_v48 = vmul.f32 %v322_v43, %v259_v44 }
  0x70   : > { %v331_v49 = vadd.f32 %v330_v47, %v329_v42  ;;  %v337_v51 = vadd.f32 %v336_v40, %v335_v45 }
  0x71   : > { %v327_v52 = vadd.f32 %v326_v34, %v325_v41 }
  0x72   : > { %v333_v50 = vadd.f32 %v332_v38, %v331_v49  ;;  %v339_v54 = vadd.f32 %v338_v48, %v337_v51 }
  0x73   : > { %v328_v55 = vand.u32 2147483647, %v327_v52 }
  0x74   : > { %v334_v56 = vand.u32 2147483647, %v333_v50  ;;  %v340_v57 = vand.u32 2147483647, %v339_v54 }
  0x75   : > { %v343_v58 = vmul.f32 %v342_v53, %v328_v55 }
  0x76   : > { %v344_v59 = vmul.f32 %v342_v53, %v334_v56  ;;  %v345_v60 = vmul.f32 %v342_v53, %v340_v57 }
  0x77   : > { %346 = vst [vmem:[%s197_s18] sm:$0x1] %v343_v58 }
  0x78   : > { %486 = vst [vmem:[%s197_s18 + $0x1] sm:$0x1] %v344_v59  ;;  %487 = vst [vmem:[%s197_s18 + $0x2] sm:$0x1] %v345_v60 }
  0x79   : > { %617 = shalt.err (!%p614_p6)
}
  0x7a   : > { %s618_s8 = scalar_lea.hbm %s869_s26, 48  ;;  %s622_s28 = scalar_lea.hbm %s922_s2, 96 }
  0x7b   : > { %p619_p7 = scmp.ne.s32.totalorder %s869_s26, %s618_s8  ;;  %p623_p1 = scmp.lt.u32.totalorder %s869_s26, %s922_s2 }
  0x7c   : > { %p624_p3 = scmp.lt.u32.totalorder %s622_s28, %s618_s8  ;;  %p626_p9 = scmp.lt.u32.totalorder %s618_s8, %s869_s26 }
  0x7d   : > { %p620_p10 = pnand %p619_p7, %p930_p11 }
  0x7e   : > { %p625_p8 = por %p624_p3, %p623_p1 }
  0x7f   : > { %p621_p12 = pneg %p620_p10 }
  0x80   : > { %p627_p0 = por %p626_p9, %p625_p8 }
  0x82   : > { %p628_p5 = pnand %p627_p0, %p621_p12 }
  0x84   : > { %631 = shalt.err (!%p628_p5)
}
  0x85   : > { %s692_s6 = smov 16   ;;  %s693_s16 = smov 1  }
  0x86   : > { %498 = dma.vmem_to_hbm [thread:$0]  (%p930_p11), %s871_s19, 48, %s869_s26, %s352_s12, %s692_s6, %s692_s6, %s693_s16  }
  0x87 PF: > { %s381_s18 = sand.u32 1, %s666_s9   ;;  %p931_p13 = scmp.ne.s32.totalorder %s927_s24, 0 }
  0x88   : > { %p932_p2 = scmp.ge.s32.totalorder %s686_s14, 2  ;;  %s382_s20 = scalar_lea.sflag [#allocation4], %s381_s18 }
  0x8a   : > { %p505_p4 = pnand %p932_p2, %p931_p13 }
  0x8c   : > { %661 = dma.done.wait (!%p505_p4), %s382_s20, 48  }
  0x8d   : > { %663 = vsyncadd (!%p505_p4), %s382_s20, 4294967248  ;;  %s18_s14 = sadd.s32 1, %s686_s14   ;;  %s933_s9 = smov %s670_s10 }
  0x8e   : > { %p15_p6 = scmp.ge.s32.totalorder %s18_s14, 4   ;;  %s934_s10 = smov %s674_s11 }
  0x8f   : > { %s935_s11 = smov %s765_s23  ;;  %s936_s12 = smov %s682_s13 }
  0x90   : > { %s937_s13 = smov %s939_s17  ;;  %17 = sbr.rel (!%p15_p6) target bundleno = 6 (0x6), region = 95 }
  0x97   :  { %387 = vsyncpa [#allocation3], 1 }
  0x98   :  { %389 = vsyncpa [#allocation3 + $0x1], 1 }
  0x99   :  { %390 = vsyncpa [#allocation4], 1 }
  0x9a   :  { %392 = vsyncpa [#allocation4 + $0x1], 1 }

</bundles_post_ra>
